<compile_context>
chip_gen: v7x
topology: tpu7x:2x2x1
jax: 0.10.0
libtpu: 0.0.40
codegen_flags: <defaults>
</compile_context>

<pallas_src>
import jax
import jax.numpy as jnp
from jax.experimental import pallas as pl
from jax.experimental.pallas import tpu as pltpu

WIDTH = 64


def _make_kernel(batch, tile_m, ragged):
    """Builds the fused kernel for a fixed (batch, tile, raggedness)."""

    def kernel(y_ref, t_ref, w1_ref, b1_ref, w2_ref, b2_ref, w5_ref, b5_ref,
               pred_ref, loss_ref):
        # fc1: Linear(1, W).  K=1 -> broadcast multiply on the VPU (no MXU pass).
        t = t_ref[...]                                          # (1, TM), batch in lanes
        h1 = jnp.maximum(w1_ref[...] * t + b1_ref[...], 0.0)   # (W, TM) f32

        # fc2: Linear(W, W) on the MXU, bf16 operands, f32 accumulation.
        h2 = jnp.dot(w2_ref[...], h1.astype(jnp.bfloat16),
                     preferred_element_type=jnp.float32)        # (W, TM) f32
        h2 = jnp.maximum(h2 + b2_ref[...], 0.0)

        # fc5: Linear(W, 1) as a (1,W)x(W,TM) MXU dot; result is lane-major.
        logits = jnp.dot(w5_ref[...], h2,
                         preferred_element_type=jnp.float32) + b5_ref[...]
        p = jax.nn.sigmoid(logits)                              # (1, TM)
        pred_ref[...] = p                                       # lane-dense store

        # ---- BCELoss per-tile sum (PyTorch log clamp at -100), VPU + lane reduce.
        y = y_ref[...]                                          # (1, TM)
        log_p = jnp.maximum(jnp.log(p), -100.0)
        log_1p = jnp.maximum(jnp.log(1.0 - p), -100.0)
        per_elem = y * log_p + (1.0 - y) * log_1p               # (1, TM)

        if ragged:  # only emitted when B % tile_m != 0
            i = pl.program_id(0)
            lane_ids = (jax.lax.broadcasted_iota(jnp.int32, (1, tile_m), 1)
                        + i * tile_m)
            per_elem = jnp.where(lane_ids < batch, per_elem, 0.0)

        # Per-tile partial sum -> SMEM scalar output (summed in the wrapper).
        loss_ref[0, 0] = -jnp.sum(per_elem)

    return kernel


def enc_inf_c_forward(x, target, params, tile_m=None):
    """x: (B, 2) f32 (column 1 is the BCE label), target: (B, 1) f32.

    Returns (pred (B, 1), loss scalar), matching Enc_inf_C.forward((x, target)).
    """
    w1, b1, w2, b2, w5, b5 = params
    B = target.shape[0]
    width = w2.shape[0]

    if tile_m is None:
        # Whole batch in one tile when small, else lane-dense multiple of 128.
        tile_m = B if B <= 2048 else 2048
    num_tiles = pl.cdiv(B, tile_m)
    ragged = (B % tile_m) != 0

    # Lane-major (batch-in-lanes) views; free reshapes / cheap strided slice.
    label_row = x[:, 1].reshape(1, B)
    target_row = target.reshape(1, B)
    w2_bf = w2.astype(jnp.bfloat16)          # static weight: cast once for the MXU
    w5_row = w5.reshape(1, width)            # fc5 weight as a row for the MXU dot

    kernel = _make_kernel(B, tile_m, ragged)

    def full(shape):  # weight tile: full array, resident in VMEM across the grid
        return pl.BlockSpec(shape, lambda i: (0, 0))

    pred_row, partial = pl.pallas_call(
        kernel,
        grid=(num_tiles,),
        in_specs=[
            pl.BlockSpec((1, tile_m), lambda i: (0, i)),      # label, lane-major
            pl.BlockSpec((1, tile_m), lambda i: (0, i)),      # target, lane-major
            full((width, 1)),                                 # w1 (fc1 weight)
            full((width, 1)),                                 # b1
            full((width, width)),                             # w2 (bf16, [out, in])
            full((width, 1)),                                 # b2
            full((1, width)),                                 # w5 (fc5 weight row)
            full((1, 1)),                                     # b5
        ],
        out_shape=(
            jax.ShapeDtypeStruct((1, B), jnp.float32),            # pred (lane-dense)
            jax.ShapeDtypeStruct((1, num_tiles), jnp.float32),    # per-tile BCE sums
        ),
        out_specs=(
            pl.BlockSpec((1, tile_m), lambda i: (0, i)),
            pl.BlockSpec((1, 1), lambda i: (0, i),
                         memory_space=pltpu.MemorySpace.SMEM),
        ),
        compiler_params=pltpu.CompilerParams(
            # No cross-iteration state -> parallel (shards across v7x's 2 TCs).
            dimension_semantics=("parallel",),
        ),
    )(label_row, target_row, w1, b1, w2_bf, b2, w5_row, b5)

    loss = jnp.sum(partial) * (1.0 / B)
    return pred_row.reshape(B, 1), loss


def init_params(key):
    """nn.Linear-style init (uniform +-1/sqrt(fan_in)), feature-major layout."""
    k1, k2, k3, k4, k5, k6 = jax.random.split(key, 6)
    w = WIDTH
    bound = 1.0 / (float(w) ** 0.5)
    # fc1: Linear(1, 64)  -> weight (64, 1), bias (64, 1); fan_in = 1
    w1 = jax.random.uniform(k1, (w, 1), jnp.float32, -1.0, 1.0)
    b1 = jax.random.uniform(k2, (w, 1), jnp.float32, -1.0, 1.0)
    # fc2: Linear(64, 64) -> weight (64, 64) [out, in], bias (64, 1)
    w2 = jax.random.uniform(k3, (w, w), jnp.float32, -bound, bound)
    b2 = jax.random.uniform(k4, (w, 1), jnp.float32, -bound, bound)
    # fc5: Linear(64, 1)  -> weight stored as a column (64, 1), bias (1, 1)
    w5 = jax.random.uniform(k5, (w, 1), jnp.float32, -bound, bound)
    b5 = jax.random.uniform(k6, (1, 1), jnp.float32, -bound, bound)
    return (w1, b1, w2, b2, w5, b5)


def _reference(x, target, params):
    """Pure-JAX reference matching the kernel's numerics (bf16 fc2, f32 accum)."""
    w1, b1, w2, b2, w5, b5 = params
    h1 = jax.nn.relu(target @ w1.T + b1.T)                           # (B, W) f32
    h2 = jax.nn.relu(
        jnp.dot(h1.astype(jnp.bfloat16), w2.astype(jnp.bfloat16).T,
                preferred_element_type=jnp.float32) + b2.T)          # (B, W) f32
    p = jax.nn.sigmoid(h2 @ w5 + b5)                                 # (B, 1)
    y = x[:, 1:2]
    log_p = jnp.maximum(jnp.log(p), -100.0)
    log_1p = jnp.maximum(jnp.log(1.0 - p), -100.0)
    loss = jnp.mean(-(y * log_p + (1.0 - y) * log_1p))
    return p, loss


if __name__ == "__main__":
    key = jax.random.PRNGKey(0)
    kp, kx, kt, kx2, kt2 = jax.random.split(key, 5)
    params = init_params(kp)

    # Case 1: tiny batch, single tile.
    B = 8
    x = jax.random.uniform(kx, (B, 2), jnp.float32, 0.0, 1.0)   # col 1 is the label
    target = jax.random.normal(kt, (B, 1), jnp.float32)
    pred, loss = enc_inf_c_forward(x, target, params)
    jax.block_until_ready((pred, loss))
    p_ref, loss_ref = _reference(x, target, params)
    assert pred.shape == (B, 1)
    assert jnp.allclose(pred, p_ref, atol=1e-4), "prediction mismatch (B=8)"
    assert jnp.allclose(loss, loss_ref, atol=1e-4), "loss mismatch (B=8)"

    # Case 2: multi-tile + ragged last tile (exercises masking & partial sums).
    B2 = 200
    x2 = jax.random.uniform(kx2, (B2, 2), jnp.float32, 0.0, 1.0)
    target2 = jax.random.normal(kt2, (B2, 1), jnp.float32)
    pred2, loss2 = enc_inf_c_forward(x2, target2, params, tile_m=128)
    jax.block_until_ready((pred2, loss2))
    p_ref2, loss_ref2 = _reference(x2, target2, params)
    assert pred2.shape == (B2, 1)
    assert jnp.allclose(pred2, p_ref2, atol=1e-4), "prediction mismatch (B=200)"
    assert jnp.allclose(loss2, loss_ref2, atol=1e-4), "loss mismatch (B=200)"

    print("KERNEL_OK")
</pallas_src>

<mosaic_0001>
module attributes {stable_mosaic.version = 11 : i64} {
  func.func @kernel(%arg0: i32, %arg1: memref<1x8xf32, #tpu.memory_space<vmem>>, %arg2: memref<1x8xf32, #tpu.memory_space<vmem>>, %arg3: memref<64x1xf32, #tpu.memory_space<vmem>>, %arg4: memref<64x1xf32, #tpu.memory_space<vmem>>, %arg5: memref<64x64xbf16, #tpu.memory_space<vmem>>, %arg6: memref<64x1xf32, #tpu.memory_space<vmem>>, %arg7: memref<1x64xf32, #tpu.memory_space<vmem>>, %arg8: memref<1x1xf32, #tpu.memory_space<vmem>>, %arg9: memref<1x8xf32, #tpu.memory_space<vmem>>, %arg10: memref<1x1xf32, #tpu.memory_space<smem>>) attributes {dimension_semantics = [#tpu.dimension_semantics<parallel>], iteration_bounds = array<i64: 1>, scalar_prefetch = 0 : i64, scratch_operands = 0 : i64, tpu.core_type = #tpu.core_type<tc>, window_params = [{transform_indices = @transform_0, window_bounds = array<i64: 1, 8>}, {transform_indices = @transform_1, window_bounds = array<i64: 1, 8>}, {pipeline_mode = #tpu.pipeline_mode<synchronous>, transform_indices = @transform_2, window_bounds = array<i64: 64, 1>}, {pipeline_mode = #tpu.pipeline_mode<synchronous>, transform_indices = @transform_3, window_bounds = array<i64: 64, 1>}, {pipeline_mode = #tpu.pipeline_mode<synchronous>, transform_indices = @transform_4, window_bounds = array<i64: 64, 64>}, {pipeline_mode = #tpu.pipeline_mode<synchronous>, transform_indices = @transform_5, window_bounds = array<i64: 64, 1>}, {pipeline_mode = #tpu.pipeline_mode<synchronous>, transform_indices = @transform_6, window_bounds = array<i64: 1, 64>}, {pipeline_mode = #tpu.pipeline_mode<synchronous>, transform_indices = @transform_7, window_bounds = array<i64: 1, 1>}, {transform_indices = @transform_8, window_bounds = array<i64: 1, 8>}, {transform_indices = @transform_9, window_bounds = array<i64: 1, 1>}]} {
    %c0 = arith.constant 0 : index
    %c0_0 = arith.constant 0 : index
    %0 = vector.load %arg2[%c0, %c0_0] : memref<1x8xf32, #tpu.memory_space<vmem>>, vector<1x8xf32>
    %c0_1 = arith.constant 0 : index
    %c0_2 = arith.constant 0 : index
    %1 = vector.load %arg3[%c0_1, %c0_2] : memref<64x1xf32, #tpu.memory_space<vmem>>, vector<64x1xf32>
    %2 = vector.broadcast %1 : vector<64x1xf32> to vector<64x8xf32>
    %3 = vector.broadcast %0 : vector<1x8xf32> to vector<64x8xf32>
    %4 = arith.mulf %2, %3 : vector<64x8xf32>
    %c0_3 = arith.constant 0 : index
    %c0_4 = arith.constant 0 : index
    %5 = vector.load %arg4[%c0_3, %c0_4] : memref<64x1xf32, #tpu.memory_space<vmem>>, vector<64x1xf32>
    %6 = vector.broadcast %5 : vector<64x1xf32> to vector<64x8xf32>
    %7 = arith.addf %4, %6 : vector<64x8xf32>
    %cst = arith.constant 0.000000e+00 : f32
    %8 = vector.broadcast %cst : f32 to vector<64x8xf32>
    %9 = arith.maximumf %7, %8 : vector<64x8xf32>
    %c0_5 = arith.constant 0 : index
    %c0_6 = arith.constant 0 : index
    %10 = vector.load %arg5[%c0_5, %c0_6] : memref<64x64xbf16, #tpu.memory_space<vmem>>, vector<64x64xbf16>
    %11 = arith.truncf %9 : vector<64x8xf32> to vector<64x8xbf16>
    %cst_7 = arith.constant dense<0.000000e+00> : vector<64x8xf32>
    %12 = tpu.matmul %10, %11, %cst_7 {dimension_numbers = #tpu.dot_dimension_numbers<[1], [0], [0], [1], [0, 0, 1, 1], [], []>} : vector<64x64xbf16>, vector<64x8xbf16>, vector<64x8xf32> -> vector<64x8xf32>
    %c0_8 = arith.constant 0 : index
    %c0_9 = arith.constant 0 : index
    %13 = vector.load %arg6[%c0_8, %c0_9] : memref<64x1xf32, #tpu.memory_space<vmem>>, vector<64x1xf32>
    %14 = vector.broadcast %13 : vector<64x1xf32> to vector<64x8xf32>
    %15 = arith.addf %12, %14 : vector<64x8xf32>
    %cst_10 = arith.constant 0.000000e+00 : f32
    %16 = vector.broadcast %cst_10 : f32 to vector<64x8xf32>
    %17 = arith.maximumf %15, %16 : vector<64x8xf32>
    %c0_11 = arith.constant 0 : index
    %c0_12 = arith.constant 0 : index
    %18 = vector.load %arg7[%c0_11, %c0_12] : memref<1x64xf32, #tpu.memory_space<vmem>>, vector<1x64xf32>
    %cst_13 = arith.constant dense<0.000000e+00> : vector<1x8xf32>
    %19 = tpu.matmul %18, %17, %cst_13 {dimension_numbers = #tpu.dot_dimension_numbers<[1], [0], [0], [1], [0, 0, 1, 1], [], []>} : vector<1x64xf32>, vector<64x8xf32>, vector<1x8xf32> -> vector<1x8xf32>
    %c0_14 = arith.constant 0 : index
    %c0_15 = arith.constant 0 : index
    %20 = vector.load %arg8[%c0_14, %c0_15] : memref<1x1xf32, #tpu.memory_space<vmem>>, vector<1x1xf32>
    %21 = vector.broadcast %20 : vector<1x1xf32> to vector<1x8xf32>
    %22 = arith.addf %19, %21 : vector<1x8xf32>
    %23 = arith.negf %22 : vector<1x8xf32>
    %24 = math.exp %23 : vector<1x8xf32>
    %cst_16 = arith.constant 1.000000e+00 : f32
    %25 = vector.broadcast %cst_16 : f32 to vector<1x8xf32>
    %26 = arith.addf %25, %24 : vector<1x8xf32>
    %27 = arith.divf %25, %26 : vector<1x8xf32>
    %c0_17 = arith.constant 0 : index
    %c0_18 = arith.constant 0 : index
    %28 = vector.load %arg9[%c0_17, %c0_18] : memref<1x8xf32, #tpu.memory_space<vmem>>, vector<1x8xf32>
    tpu.vector_store %arg9[%c0_17, %c0_18], %27 {strides = array<i32>} : memref<1x8xf32, #tpu.memory_space<vmem>>, vector<1x8xf32>,
    %c0_19 = arith.constant 0 : index
    %c0_20 = arith.constant 0 : index
    %29 = vector.load %arg1[%c0_19, %c0_20] : memref<1x8xf32, #tpu.memory_space<vmem>>, vector<1x8xf32>
    %30 = math.log %27 : vector<1x8xf32>
    %cst_21 = arith.constant -1.000000e+02 : f32
    %31 = vector.broadcast %cst_21 : f32 to vector<1x8xf32>
    %32 = arith.maximumf %30, %31 : vector<1x8xf32>
    %cst_22 = arith.constant 1.000000e+00 : f32
    %33 = vector.broadcast %cst_22 : f32 to vector<1x8xf32>
    %34 = arith.subf %33, %27 : vector<1x8xf32>
    %35 = math.log %34 : vector<1x8xf32>
    %cst_23 = arith.constant -1.000000e+02 : f32
    %36 = vector.broadcast %cst_23 : f32 to vector<1x8xf32>
    %37 = arith.maximumf %35, %36 : vector<1x8xf32>
    %38 = arith.mulf %29, %32 : vector<1x8xf32>
    %cst_24 = arith.constant 1.000000e+00 : f32
    %39 = vector.broadcast %cst_24 : f32 to vector<1x8xf32>
    %40 = arith.subf %39, %29 : vector<1x8xf32>
    %41 = arith.mulf %40, %37 : vector<1x8xf32>
    %42 = arith.addf %38, %41 : vector<1x8xf32>
    %43 = vector.shape_cast %42 : vector<1x8xf32> to vector<1x1x8xf32>
    %cst_25 = arith.constant dense<0.000000e+00> : vector<1xf32>
    %44 = vector.multi_reduction <add>, %43, %cst_25 [1, 2] : vector<1x1x8xf32> to vector<1xf32>
    %45 = vector.shape_cast %44 : vector<1xf32> to vector<1x1x1xf32>
    %46 = vector.extract %45[0, 0, 0] : f32 from vector<1x1x1xf32>
    %cst_26 = arith.constant 0.000000e+00 : f32
    %47 = arith.subf %cst_26, %46 : f32
    %c0_27 = arith.constant 0 : index
    %c0_28 = arith.constant 0 : index
    %48 = memref.load %arg10[%c0_27, %c0_28] : memref<1x1xf32, #tpu.memory_space<smem>>
    memref.store %47, %arg10[%c0_27, %c0_28] : memref<1x1xf32, #tpu.memory_space<smem>>
    return
  }
  func.func @transform_0(%arg0: i32) -> (i32, i32) {
    %c0_i32 = arith.constant 0 : i32
    %c0_i32_0 = arith.constant 0 : i32
    return %c0_i32, %arg0 : i32, i32
  }
  func.func @transform_1(%arg0: i32) -> (i32, i32) {
    %c0_i32 = arith.constant 0 : i32
    %c0_i32_0 = arith.constant 0 : i32
    return %c0_i32, %arg0 : i32, i32
  }
  func.func @transform_2(%arg0: i32) -> (i32, i32) {
    %c0_i32 = arith.constant 0 : i32
    %c0_i32_0 = arith.constant 0 : i32
    %c0_i32_1 = arith.constant 0 : i32
    return %c0_i32, %c0_i32_0 : i32, i32
  }
  func.func @transform_3(%arg0: i32) -> (i32, i32) {
    %c0_i32 = arith.constant 0 : i32
    %c0_i32_0 = arith.constant 0 : i32
    %c0_i32_1 = arith.constant 0 : i32
    return %c0_i32, %c0_i32_0 : i32, i32
  }
  func.func @transform_4(%arg0: i32) -> (i32, i32) {
    %c0_i32 = arith.constant 0 : i32
    %c0_i32_0 = arith.constant 0 : i32
    %c0_i32_1 = arith.constant 0 : i32
    return %c0_i32, %c0_i32_0 : i32, i32
  }
  func.func @transform_5(%arg0: i32) -> (i32, i32) {
    %c0_i32 = arith.constant 0 : i32
    %c0_i32_0 = arith.constant 0 : i32
    %c0_i32_1 = arith.constant 0 : i32
    return %c0_i32, %c0_i32_0 : i32, i32
  }
  func.func @transform_6(%arg0: i32) -> (i32, i32) {
    %c0_i32 = arith.constant 0 : i32
    %c0_i32_0 = arith.constant 0 : i32
    %c0_i32_1 = arith.constant 0 : i32
    return %c0_i32, %c0_i32_0 : i32, i32
  }
  func.func @transform_7(%arg0: i32) -> (i32, i32) {
    %c0_i32 = arith.constant 0 : i32
    %c0_i32_0 = arith.constant 0 : i32
    %c0_i32_1 = arith.constant 0 : i32
    return %c0_i32, %c0_i32_0 : i32, i32
  }
  func.func @transform_8(%arg0: i32) -> (i32, i32) {
    %c0_i32 = arith.constant 0 : i32
    %c0_i32_0 = arith.constant 0 : i32
    return %c0_i32, %arg0 : i32, i32
  }
  func.func @transform_9(%arg0: i32) -> (i32, i32) {
    %c0_i32 = arith.constant 0 : i32
    %c0_i32_0 = arith.constant 0 : i32
    return %c0_i32, %arg0 : i32, i32
  }
}

</mosaic_0001>

<bundles_post_ra>
// kernel: tpu_custom_call.1
= control target key start
LH: loop header
LB: loop body
LE: loop exit
PB: predicated region body
PF: predicated region fallthrough
CT: control target
= control target key end

     0   :  { %s789_s0 = inlined_call_operand.vmem [shape: f32[1,8], index: 0, kind: input, shape index: {}]   ;;  %s790_s1 = inlined_call_operand.vmem [shape: f32[1,8], index: 1, kind: input, shape index: {}]   ;;  %s791_s2 = inlined_call_operand.vmem [shape: f32[64,1], index: 2, kind: input, shape index: {}]   ;;  %s792_s3 = inlined_call_operand.vmem [shape: f32[64,1], index: 3, kind: input, shape index: {}]   ;;  %s793_s4 = inlined_call_operand.vmem [shape: bf16[64,64], index: 4, kind: input, shape index: {}]   ;;  %s794_s5 = inlined_call_operand.vmem [shape: f32[64,1], index: 5, kind: input, shape index: {}]   ;;  %s795_s6 = inlined_call_operand.vmem [shape: f32[1,64], index: 6, kind: input, shape index: {}]   ;;  %s796_s7 = inlined_call_operand.<no memory space> [shape: f32[1,1], index: 7, kind: input, shape index: {}]   ;;  %s797_s8 = inlined_call_operand.hbm [shape: f32[1,8], index: 8, kind: output, shape index: {0}]   ;;  %s798_s9 = inlined_call_operand.hbm [shape: f32[1,1], index: 9, kind: output, shape index: {1}]  }
   0x1   :  { %v15_v0 = vstv %s796_s7 }
   0x2   :  { %16 = vst [vmem:[#allocation2] sm:$0x1] %v15_v0 }
   0x3   :  { %17 = vsyncpa [#allocation4], 0  ;;  %v99_v1 = vld [vmem:[%s792_s3] sm:$0xff]  ;;  %v606_v3 = vmov 0   ;;  %v100_v4 = vld [vmem:[%s792_s3 + $0x8] sm:$0xff] }
   0x4   :  { %v37_v2 = vld [vmem:[%s791_s2] sm:$0xff]  ;;  %557 = vset.pattern.permute.xlu1 %v606_v3  ;;  %556 = vset.pattern.permute.xlu0 %v606_v3  ;;  %v38_v5 = vld [vmem:[%s791_s2 + $0x8] sm:$0xff]  ;;  %v40_v6 = vld [vmem:[%s791_s2 + $0x18] sm:$0xff] }
   0x5   :  { %109 = vperm.xlu1 %557, %v99_v1   ;;  %47 = vperm.xlu0 %556, %v37_v2   ;;  %v39_v7 = vld [vmem:[%s791_s2 + $0x10] sm:$0xff]  ;;  %v102_v8 = vld [vmem:[%s792_s3 + $0x18] sm:$0xff] }
   0x6   :  { %v101_v9 = vld [vmem:[%s792_s3 + $0x10] sm:$0xff] }
   0x9   :  { %114 = vperm.xlu1 %557, %v100_v4   ;;  %52 = vperm.xlu0 %556, %v38_v5  }
   0xd   :  { %62 = vperm.xlu1 %557, %v40_v6   ;;  %57 = vperm.xlu0 %556, %v39_v7  }
   0xe   :  { %18 = vsyncpa [#allocation5], 0  ;;  %v42_v10 = vld [vmem:[%s791_s2 + $0x28] sm:$0xff]  ;;  %v41_v11 = vld [vmem:[%s791_s2 + $0x20] sm:$0xff]  ;;  %vm243_vm0 = vcmask 523264   ;;  %vm608_vm1 = vmmov 0  }
   0xf   :  { %v104_v12 = vld [vmem:[%s792_s3 + $0x28] sm:$0xff]  ;;  %v103_v13 = vld [vmem:[%s792_s3 + $0x20] sm:$0xff]  ;;  %v44_v14 = vld [vmem:[%s791_s2 + $0x38] sm:$0xff]  ;;  %vm419_vm2 = vcmask 57344   ;;  %s610_s22 = smov [#allocation3]  }
  0x10   :  { %v43_v15 = vld [vmem:[%s791_s2 + $0x30] sm:$0xff]  ;;  %v106_v16 = vld [vmem:[%s792_s3 + $0x38] sm:$0xff]  ;;  %v176_v18 = vld [vmem:[%s794_s5 + $0x8] sm:$0xff]  ;;  %s452_s23 = sshll.u32 %s610_s22, 4  ;;  %s453_s23 = int_to_ptr.vmem [resolvable:$true] %s452_s23 }
  0x11   :  { %124 = vperm.xlu1 %557, %v102_v8   ;;  %119 = vperm.xlu0 %556, %v101_v9   ;;  %v105_v17 = vld [vmem:[%s792_s3 + $0x30] sm:$0xff]  ;;  %v175_v19 = vld [vmem:[%s794_s5] sm:$0xff]  ;;  %v178_v20 = vld [vmem:[%s794_s5 + $0x18] sm:$0xff]  ;;  %s570_s2 = scalar_lea.vmem %s453_s23, 16  ;;  %s574_s24 = scalar_lea.vmem %s453_s23, 32 }
  0x12   :  { %v177_v21 = vld [vmem:[%s794_s5 + $0x10] sm:$0xff]  ;;  %v558_v22 = vld [vmem:[%s793_s4] sm:$0xff]   ;;  %v180_v23 = vld [vmem:[%s794_s5 + $0x28] sm:$0xff]  ;;  %p571_p0 = scmp.ne.s32.totalorder %s453_s23, %s570_s2  ;;  %p575_p1 = scmp.lt.s32.totalorder %s453_s23, %s453_s23 }
  0x13   :  { %v179_v24 = vld [vmem:[%s794_s5 + $0x20] sm:$0xff]  ;;  %509 = vmatprep.mubr.msk.bf16.mxu0 %vm243_vm0, %v558_v22  ;;  %v182_v25 = vld [vmem:[%s794_s5 + $0x38] sm:$0xff]  ;;  %v181_v26 = vld [vmem:[%s794_s5 + $0x30] sm:$0xff]  ;;  %p576_p2 = scmp.lt.s32.totalorder %s574_s24, %s570_s2 }
  0x14   :  { %v330_v27 = vld [vmem:[#allocation2] sm:$0x1]  ;;  %v559_v9 = vld [vmem:[%s793_s4 + $0x8] sm:$0xff]  }
  0x15   :  { %72 = vperm.xlu1 %557, %v42_v10   ;;  %67 = vperm.xlu0 %556, %v41_v11   ;;  %v473_v28 = vld [vmem:[%s790_s1] ss:$0 sm:$0xff]  ;;  %v560_v10 = vld [vmem:[%s793_s4 + $0x10] sm:$0xff]   ;;  %v561_v11 = vld [vmem:[%s793_s4 + $0x18] sm:$0xff]   ;;  %p577_p3 = por %p576_p2, %p575_p1 }
  0x17   :  { %p578_p4 = pnand %p577_p3, %p571_p0 }
  0x19   :  { %134 = vperm.xlu1 %557, %v104_v12   ;;  %129 = vperm.xlu0 %556, %v103_v13   ;;  %v607_v12 = vmov 0.0|0.0   ;;  %v609_v13 = vmov 0.0  }
  0x1a   :  { %536 = vmatprep.subr.bf16.mxu1 %v607_v12  ;;  %533 = vmatprep.mubr.msk.f32.mxu1 %vm608_vm1, %v609_v13 }
  0x1d   :  { %82 = vperm.xlu1 %557, %v44_v14   ;;  %77 = vperm.xlu0 %556, %v43_v15  }
  0x21   :  { %144 = vperm.xlu1 %557, %v106_v16   ;;  %139 = vperm.xlu0 %556, %v105_v17  }
  0x25   :  { %190 = vperm.xlu1 %557, %v176_v18   ;;  %185 = vperm.xlu0 %556, %v175_v19  }
  0x29   :  { %200 = vperm.xlu1 %557, %v178_v20   ;;  %195 = vperm.xlu0 %556, %v177_v21  }
  0x2d   :  { %210 = vperm.xlu1 %557, %v180_v23   ;;  %205 = vperm.xlu0 %556, %v179_v24  }
  0x31   :  { %220 = vperm.xlu1 %557, %v182_v25   ;;  %215 = vperm.xlu0 %556, %v181_v26  }
  0x35   :  { %333 = vperm.xlu0 %556, %v330_v27  }
  0x84   :  { %v110_v29 = vpop.permute.xlu1 %109  ;;  %v48_v30 = vpop.permute.xlu0 %47 }
  0x85   :  { %v91_v31 = vmul.f32 %v473_v28, %v48_v30 }
  0x87   :  { %v147_v34 = vadd.f32 %v110_v29, %v91_v31 }
  0x88   :  { %v115_v32 = vpop.permute.xlu1 %114  ;;  %v53_v33 = vpop.permute.xlu0 %52 }
  0x89   :  { %v92_v35 = vmul.f32 %v473_v28, %v53_v33  ;;  %v155_v39 = vmax.f32 %v147_v34, 0.0 }
  0x8b   :  { %v148_v36 = vadd.f32 %v115_v32, %v92_v35 }
  0x8c   :  { %v63_v37 = vpop.permute.xlu1 %62  ;;  %v58_v38 = vpop.permute.xlu0 %57 }
  0x8d   :  { %v156_v40 = vmax.f32 %v148_v36, 0.0  ;;  %v94_v41 = vmul.f32 %v473_v28, %v63_v37  ;;  %v93_v42 = vmul.f32 %v473_v28, %v58_v38 }
  0x8f   :  { %v171_v43 = vpack.c.bf16 %v156_v40, %v155_v39 }
  0x90   :  { %v125_v44 = vpop.permute.xlu1 %124  ;;  %v120_v45 = vpop.permute.xlu0 %119 }
  0x91   :  { %v150_v46 = vadd.f32 %v125_v44, %v94_v41  ;;  %v149_v47 = vadd.f32 %v120_v45, %v93_v42  ;;  %501 = vmatprep.subr.bf16.mxu0 %v171_v43 }
  0x92   :  { %502 = vmatpush3.bf16.msra.mxu0 %v171_v43 }
  0x93   :  { %v158_v48 = vmax.f32 %v150_v46, 0.0  ;;  %v157_v49 = vmax.f32 %v149_v47, 0.0 }
  0x94   :  { %v73_v50 = vpop.permute.xlu1 %72  ;;  %v68_v51 = vpop.permute.xlu0 %67 }
  0x95   :  { %v172_v52 = vpack.c.bf16 %v158_v48, %v157_v49  ;;  %v96_v53 = vmul.f32 %v473_v28, %v73_v50  ;;  %v95_v54 = vmul.f32 %v473_v28, %v68_v51  ;;  %v329_v50 = vld [vmem:[%s795_s6] sm:$0x1]  ;;  %v336_v51 = vlaneseq }
  0x97   :  { %503 = vmatprep.subr.bf16.mxu0 %v172_v52 }
  0x98   :  { %v135_v55 = vpop.permute.xlu1 %134  ;;  %v130_v56 = vpop.permute.xlu0 %129  ;;  %504 = vmatpush3.bf16.msra.mxu0 %v172_v52  ;;  %v337_v52 = vshrl.u32 %v336_v51, 7 }
  0x99   :  { %v152_v57 = vadd.f32 %v135_v55, %v96_v53  ;;  %v151_v58 = vadd.f32 %v130_v56, %v95_v54 }
  0x9a   :  { %v338_v53 = vsub.s32 0, %v337_v52 }
  0x9b   :  { %v160_v59 = vmax.f32 %v152_v57, 0.0  ;;  %v159_v60 = vmax.f32 %v151_v58, 0.0 }
  0x9c   :  { %v83_v61 = vpop.permute.xlu1 %82  ;;  %v78_v62 = vpop.permute.xlu0 %77 }
  0x9d   :  { %v173_v63 = vpack.c.bf16 %v160_v59, %v159_v60  ;;  %v98_v0 = vmul.f32 %v473_v28, %v83_v61  ;;  %v97_v1 = vmul.f32 %v473_v28, %v78_v62 }
  0x9f   :  { %505 = vmatprep.subr.bf16.mxu0 %v173_v63 }
  0xa0   :  { %v145_v2 = vpop.permute.xlu1 %144  ;;  %v140_v3 = vpop.permute.xlu0 %139  ;;  %506 = vmatpush3.bf16.msra.mxu0 %v173_v63 }
  0xa1   :  { %v154_v4 = vadd.f32 %v145_v2, %v98_v0  ;;  %v153_v5 = vadd.f32 %v140_v3, %v97_v1  ;;  %v421_v1 = vld [vmem:[%s789_s0] sm:$0x1] }
  0xa3   :  { %v162_v6 = vmax.f32 %v154_v4, 0.0  ;;  %v161_v7 = vmax.f32 %v153_v5, 0.0 }
  0xa4   :  { %v186_v14 = vpop.permute.xlu0 %185  ;;  %v191_v15 = vpop.permute.xlu1 %190 }
  0xa5   :  { %v174_v8 = vpack.c.bf16 %v162_v6, %v161_v7  ;;  %v430_v6 = vsub.f32 1.0, %v421_v1 }
  0xa7   :  { %507 = vmatprep.subr.bf16.mxu0 %v174_v8 }
  0xa8   :  { %508 = vmatpush3.bf16.msra.mxu0 %v174_v8  ;;  %v196_v16 = vpop.permute.xlu0 %195  ;;  %v201_v17 = vpop.permute.xlu1 %200 }
  0xab   :  { %510 = vmatmul.mubr.msk.bf16.vlgmr.msra.gmra.mrb[0].mxu0 %vm243_vm0, %v559_v9 }
  0xac   :  { %513 = vmatprep.mubr.msk.bf16.mxu0 %vm243_vm0, %v560_v10  ;;  %v206_v21 = vpop.permute.xlu0 %205  ;;  %v211_v26 = vpop.permute.xlu1 %210 }
  0xb0   :  { %v216_v33 = vpop.permute.xlu0 %215  ;;  %v221_v38 = vpop.permute.xlu1 %220 }
  0xb3   :  { %514 = vmatmul.mubr.msk.bf16.gmra.mrb[4].mxu0 %vm243_vm0, %v561_v11 }
  0xb4   :  { %v334_v54 = vpop.permute.xlu0 %333 }
  0xb5   :  { %v339_v55 = vrot.slane %v334_v54, %v338_v53 }
 0x17e   :  { %v511_v18 = vpop.f32.mrb[0].mxu0 }
 0x17f   :  { %v299_v19 = vadd.f32 %v511_v18, %v196_v16  ;;  %v290_v20 = vpop.f32.mrb[1].mxu0 }
 0x180   :  { %v291_v22 = vadd.f32 %v290_v20, %v186_v14  ;;  %v512_v23 = vpop.f32.mrb[2].mxu0 }
 0x181   :  { %v302_v24 = vadd.f32 %v512_v23, %v201_v17  ;;  %v293_v25 = vpop.f32.mrb[3].mxu0  ;;  %v323_v28 = vmax.f32 %v299_v19, 0.0 }
 0x182   :  { %v294_v27 = vadd.f32 %v293_v25, %v191_v15  ;;  %v321_v30 = vmax.f32 %v291_v22, 0.0 }
 0x183   :  { %v324_v29 = vmax.f32 %v302_v24, 0.0 }
 0x184   :  { %v322_v31 = vmax.f32 %v294_v27, 0.0 }
 0x185   :  { %v540_v32 = vpack.c.bf16 %v324_v29, %v323_v28 }
 0x186   :  { %v515_v34 = vpop.f32.mrb[4].mxu0  ;;  %v537_v35 = vpack.c.bf16 %v322_v31, %v321_v30 }
 0x187   :  { %v315_v36 = vadd.f32 %v515_v34, %v216_v33  ;;  %v306_v37 = vpop.f32.mrb[5].mxu0 }
 0x188   :  { %v307_v39 = vadd.f32 %v306_v37, %v206_v21  ;;  %v516_v40 = vpop.f32.mrb[6].mxu0  ;;  %538 = vmatpush3.bf16.msra.mxu1 %v537_v35 }
 0x189   :  { %v318_v41 = vadd.f32 %v516_v40, %v221_v38  ;;  %v309_v42 = vpop.f32.mrb[7].mxu0  ;;  %539 = vmatprep.subr.bf16.mxu1 %v607_v12  ;;  %v327_v44 = vmax.f32 %v315_v36, 0.0 }
 0x18a   :  { %v310_v43 = vadd.f32 %v309_v42, %v211_v26  ;;  %v325_v46 = vmax.f32 %v307_v39, 0.0 }
 0x18b   :  { %v328_v45 = vmax.f32 %v318_v41, 0.0 }
 0x18c   :  { %v326_v47 = vmax.f32 %v310_v43, 0.0  ;;  %541 = vmatpush3.bf16.msra.mxu1 %v540_v32 }
 0x18d   :  { %v546_v48 = vpack.c.bf16 %v328_v45, %v327_v44  ;;  %542 = vmatprep.subr.bf16.mxu1 %v607_v12 }
 0x18e   :  { %v543_v49 = vpack.c.bf16 %v326_v47, %v325_v46 }
 0x190   :  { %544 = vmatpush3.bf16.msra.mxu1 %v543_v49 }
 0x191   :  { %545 = vmatprep.subr.bf16.mxu1 %v607_v12 }
 0x194   :  { %547 = vmatpush3.bf16.msra.mxu1 %v546_v48 }
 0x197   :  { %534 = vmatmul.mubr.msk.f32.vlgmr.msra.gmra.mrb[0].mxu1 %vm243_vm0, %v329_v50 }
 0x26a   :  { %v409_v56 = vpop.f32.mrb[0].mxu1 }
 0x26b   :  { %v410_v57 = vadd.f32 %v409_v56, %v339_v55  ;;  %v535_v58 = vpop.f32.mrb[1].mxu1 }
 0x26d   :  { %v483_v59 = vmul.f32 -1.442695, %v410_v57 }
 0x26f   :  { %562 = vpow2.f32 %v483_v59 }
 0x279   :  { %v563_v60 = vpop.eup %562 }
 0x27a   :  { %v416_v61 = vadd.f32 1.0, %v563_v60 }
 0x27c   :  { %564 = vrcp.f32 %v416_v61 }
 0x286   :  { %v565_v62 = vpop.eup %564 }
 0x287   :  { %566 = vlog2.f32 %v565_v62  ;;  %v425_v63 = vsub.f32 1.0, %v565_v62  ;;  %420 = vst.msk [vmem:[#allocation3] sm:$0x1] %vm419_vm2, %v565_v62 }
 0x289   :  { %568 = vlog2.f32 %v425_v63 }
 0x291   :  { %v567_v0 = vpop.eup %566 }
 0x292   :  { %v423_v2 = vmul.f32 0.6931472, %v567_v0 }
 0x293   :  { %v569_v3 = vpop.eup %568 }
 0x294   :  { %v424_v4 = vmax.f32 %v423_v2, -100.0  ;;  %v427_v5 = vmul.f32 0.6931472, %v569_v3 }
 0x296   :  { %v428_v7 = vmax.f32 %v427_v5, -100.0  ;;  %v429_v8 = vmul.f32 %v424_v4, %v421_v1 }
 0x298   :  { %v431_v9 = vmul.f32 %v430_v6, %v428_v7 }
 0x29a   :  { %v432_v10 = vadd.f32 %v431_v9, %v429_v8 }
 0x29c   :  { %v433_v11 = vsel %vm419_vm2, %v432_v10, 0.0 }
 0x29d   :  { %434 = vadd.xlane.f32.xlu1 %v433_v11 }
 0x29e   :  { %581 = shalt.err (!%p578_p4)
}
 0x29f   :  { %s582_s26 = scalar_lea.hbm %s797_s8, 16 }
 0x2a0   :  { %p583_p5 = scmp.ne.s32.totalorder %s797_s8, %s582_s26  ;;  %p586_p6 = scmp.lt.u32.totalorder %s582_s26, %s797_s8 }
 0x2a2   :  { %p588_p7 = pnand %p586_p6, %p583_p5 }
 0x2a4   :  { %591 = shalt.err (!%p588_p7)
}
 0x2a5   :  { %455 = dma.vmem_to_hbm [thread:$0]  %s453_s23, 16, %s797_s8, [#allocation4]  }
 0x2a6   :  { %s592_s15 = scalar_lea.hbm %s798_s9, 16 }
 0x2a7   :  { %p593_p8 = scmp.ne.s32.totalorder %s798_s9, %s592_s15  ;;  %p596_p9 = scmp.lt.u32.totalorder %s592_s15, %s798_s9 }
 0x2a9   :  { %p598_p10 = pnand %p596_p9, %p593_p8 }
 0x32a   :  { %v435_v12 = vpop.xlane.xlu1 %434 }
 0x32b   :  { %v436_v13 = vrot.slane %v435_v12, 4 }
 0x32d   :  { %v437_v14 = vadd.f32 %v436_v13, %v435_v12 }
 0x32f   :  { %v438_v15 = vrot.slane %v437_v14, 2 }
 0x331   :  { %v439_v16 = vadd.f32 %v438_v15, %v437_v14 }
 0x333   :  { %v440_v17 = vrot.slane %v439_v16, 1 }
 0x335   :  { %v441_v18 = vadd.f32 %v440_v17, %v439_v16 }
 0x337   :  { %548 = vpush %v441_v18 }
 0x368   :  { %s549_s11 = spop %548 }
 0x369   :  { %s443_s12 = ssub.f32 0.0, %s549_s11 }
 0x36b   :  { %445 = sst [smem:[#allocation6]] %s443_s12 }
 0x36c   :  { %601 = shalt.err (!%p598_p10)
}
 0x36d   :  { %s611_s7 = smov [#allocation6]  }
 0x36e   :  { %463 = dma.smem_to_hbm %s611_s7, 16, %s798_s9, [#allocation5]  }
 0x36f   :  { %602 = dma.done.wait [#allocation4], 16  }
 0x370   :  { %603 = vsyncadd [#allocation4], 4294967280 }
 0x371   :  { %604 = dma.done.wait [#allocation5], 16  }
 0x372   :  { %605 = vsyncadd [#allocation5], 4294967280 }
 0x373   :  { %470 = sfence }
 0x374   :  { %471 = vsyncpa [#allocation4], 1 }
 0x375   :  { %472 = vsyncpa [#allocation5], 1 }

</bundles_post_ra>
